<compile_context>
chip_gen: v5e
topology: v5e:2x2
jax: 0.10.0
libtpu: 0.0.40
codegen_flags: <defaults>
</compile_context>

<pallas_src>
from functools import partial

import jax
import jax.numpy as jnp
from jax.experimental import pallas as pl
from jax.experimental.pallas import tpu as pltpu


def _round_up(n, m):
    return (n + m - 1) // m * m


def _vmem_capacity_bytes():
    try:
        return int(pltpu.get_tpu_info().vmem_capacity_bytes)
    except Exception:
        return 64 * 1024 * 1024  # conservative fallback (v7x per-TensorCore VMEM)


def _pick_batch_tile(batch):
    """Batch tile tm (<=128) and padded batch Bp (rounded only to tm)."""
    bp8 = _round_up(batch, 8)
    if bp8 <= 8:
        tm = bp8
    else:
        # >= 2 tiles: engages v7x's second TensorCore via the "parallel" axis and
        # overlaps x/out DMA with compute; 128 cap matches the MXU on all generations.
        tm = min(128, _round_up(pl.cdiv(bp8, 2), 8))
    return tm, _round_up(batch, tm)


def _pick_vmem_limit(tm, Dp, Cp):
    """Size the VMEM limit from real buffers, capped at ~85% of physical capacity."""
    weight_bytes = (2 * Dp * Dp + Dp * Cp) * 2 + Dp * 4      # bf16 weights (x1) + f32 bias
    io_bytes = 2 * tm * Dp * 2 + 2 * tm * Cp * 4             # bf16 x / f32 out, double-buffered
    act_bytes = 2 * tm * Dp * 4                              # f32 hidden-activation headroom
    need = weight_bytes + io_bytes + act_bytes
    cap = _vmem_capacity_bytes()
    if weight_bytes + io_bytes > int(0.85 * cap):
        raise NotImplementedError(
            "Resident-weight BigMLP exceeds the VMEM budget for this chip; "
            "TODO(synk): streamed-weight (emit_pipeline K/N-tiled) path not implemented.")
    return min(int(0.85 * cap), max(need + (8 << 20), 32 << 20))


def bigmlp_kernel(x_ref, w1_ref, b1_ref, w2_ref, w3_ref, o_ref):
    # x_ref:  (tm, Dp) bf16  flattened, padded input tile
    # w1_ref: (Dp, Dp) bf16  linear1 weight (transposed), bias b1_ref (1, Dp) f32
    # w2_ref: (Dp, Dp) bf16  linear2 weight (transposed, no bias)
    # w3_ref: (Dp, Cp) bf16  output linear weight (transposed, no bias)
    # o_ref:  (tm, Cp) f32
    x = x_ref[...]

    # layer 1: Linear + bias -> ReLU -> Dropout(identity, eval). Zero-padded bias lanes
    # are load-bearing: ReLU(0 + 0) = 0 keeps padding from contaminating layer 2.
    h = jnp.dot(x, w1_ref[...], preferred_element_type=jnp.float32)
    h = jnp.maximum(h + b1_ref[...], 0.0)                       # f32 elementwise (VPU, v5e-safe)

    # layer 2: Linear(no bias) -> ReLU -> Dropout(identity, eval)
    h = jnp.dot(h.astype(jnp.bfloat16), w2_ref[...],
                preferred_element_type=jnp.float32)
    h = jnp.maximum(h, 0.0)

    # output: Linear(no bias)
    o_ref[...] = jnp.dot(h.astype(jnp.bfloat16), w3_ref[...],
                         preferred_element_type=jnp.float32)


def prepare_params(params, D, C):
    """One-time (init-time) lane-dense padding + bf16 cast of the weights.

    Zero padding of rows/cols keeps the math exact; padded output columns are sliced
    off in the forward pass."""
    w1_t, b1, w2_t, w3_t = params
    Dp = _round_up(D, 128)
    Cp = _round_up(C, 128)

    def pad2(a, rows, cols, dtype):
        return jnp.zeros((rows, cols), dtype).at[:a.shape[0], :a.shape[1]].set(a.astype(dtype))

    w1_p = pad2(w1_t, Dp, Dp, jnp.bfloat16)
    b1_p = pad2(b1, 1, Dp, jnp.float32)
    w2_p = pad2(w2_t, Dp, Dp, jnp.bfloat16)
    w3_p = pad2(w3_t, Dp, Cp, jnp.bfloat16)
    return w1_p, b1_p, w2_p, w3_p


@partial(jax.jit, static_argnames=("D", "C", "seq_len", "word_embed_size"))
def bigmlp_forward(x, w1_p, b1_p, w2_p, w3_p, *, D, C, seq_len, word_embed_size):
    """x: (batch, seq_len, dim) f32 -> (batch, seq_len, word_embed_size) f32."""
    batch, s, dim = x.shape
    assert s == seq_len and s * dim == D and C == word_embed_size * seq_len
    Dp = w1_p.shape[0]
    Cp = w3_p.shape[1]

    tm, Bp = _pick_batch_tile(batch)

    # Pad the activations only (weights are pre-padded/cast once in prepare_params).
    x_flat = x.reshape(batch, D).astype(jnp.bfloat16)
    x_p = jnp.zeros((Bp, Dp), jnp.bfloat16).at[:batch, :D].set(x_flat)

    grid = (Bp // tm,)
    resident = dict(pipeline_mode=pl.Buffered(1))   # constant blocks: single-buffered

    out_p = pl.pallas_call(
        bigmlp_kernel,
        out_shape=jax.ShapeDtypeStruct((Bp, Cp), jnp.float32),
        grid_spec=pltpu.PrefetchScalarGridSpec(
            num_scalar_prefetch=0,
            grid=grid,
            in_specs=[
                pl.BlockSpec((tm, Dp), lambda i: (i, 0)),              # x: tiled over batch
                pl.BlockSpec((Dp, Dp), lambda i: (0, 0), **resident),  # w1: VMEM-resident
                pl.BlockSpec((1, Dp), lambda i: (0, 0), **resident),   # b1
                pl.BlockSpec((Dp, Dp), lambda i: (0, 0), **resident),  # w2
                pl.BlockSpec((Dp, Cp), lambda i: (0, 0), **resident),  # w3
            ],
            out_specs=pl.BlockSpec((tm, Cp), lambda i: (i, 0)),
        ),
        compiler_params=pltpu.CompilerParams(
            dimension_semantics=("parallel",),
            vmem_limit_bytes=_pick_vmem_limit(tm, Dp, Cp),
        ),
    )(x_p, w1_p, b1_p, w2_p, w3_p)

    return out_p[:batch, :C].reshape(batch, seq_len, word_embed_size)


def init_params(key, D, C):
    """Matches the module's init_weights: Linear weights ~ Normal(0, 0.01); the bias of
    linear1 keeps PyTorch's default Uniform(-1/sqrt(in), 1/sqrt(in)). Stored transposed."""
    k1, k2, k3, k4 = jax.random.split(key, 4)
    w1_t = 0.01 * jax.random.normal(k1, (D, D), jnp.float32)
    w2_t = 0.01 * jax.random.normal(k2, (D, D), jnp.float32)
    w3_t = 0.01 * jax.random.normal(k3, (D, C), jnp.float32)
    bound = 1.0 / jnp.sqrt(jnp.float32(D))
    b1 = jax.random.uniform(k4, (1, D), jnp.float32, -bound, bound)
    return (w1_t, b1, w2_t, w3_t)


def reference_forward(x, params, seq_len, word_embed_size):
    """Pure-JAX f32 reference of the same forward pass."""
    w1_t, b1, w2_t, w3_t = params
    batch = x.shape[0]
    h = x.reshape(batch, -1)
    h = jnp.maximum(h @ w1_t + b1, 0.0)
    h = jnp.maximum(h @ w2_t, 0.0)
    h = h @ w3_t
    return h.reshape(batch, seq_len, word_embed_size)


if __name__ == "__main__":
    # BigMLP config: seq_len is hard-coded to 4 in the module.
    seq_len = 4
    dim = 8                        # per-token input dim (num_input)
    word_embed_size = 8
    batch = 2

    D = dim * seq_len              # MLP input size  = 32
    C = word_embed_size * seq_len  # MLP output size = 32

    key = jax.random.PRNGKey(0)
    kx, kp = jax.random.split(key)
    x = jax.random.normal(kx, (batch, seq_len, dim), jnp.float32)
    params = init_params(kp, D, C)

    # One-time weight preparation (hoisted out of the per-call hot path).
    prepared = prepare_params(params, D, C)

    out = bigmlp_forward(x, *prepared, D=D, C=C,
                         seq_len=seq_len, word_embed_size=word_embed_size)
    out = jax.block_until_ready(out)

    ref = reference_forward(x, params, seq_len, word_embed_size)
    assert out.shape == (batch, seq_len, word_embed_size), out.shape
    # bf16 MXU operands (f32 accumulation) -> loosened tolerance vs. the f32 reference.
    assert jnp.allclose(out, ref, atol=1e-4, rtol=5e-2), "mismatch vs reference"

    print("KERNEL_OK")
</pallas_src>

<mosaic_0001>
module attributes {stable_mosaic.version = 11 : i64} {
  func.func @bigmlp_kernel(%arg0: i32, %arg1: memref<8x128xbf16, #tpu.memory_space<vmem>>, %arg2: memref<128x128xbf16, #tpu.memory_space<vmem>>, %arg3: memref<1x128xf32, #tpu.memory_space<vmem>>, %arg4: memref<128x128xbf16, #tpu.memory_space<vmem>>, %arg5: memref<128x128xbf16, #tpu.memory_space<vmem>>, %arg6: memref<8x128xf32, #tpu.memory_space<vmem>>) attributes {dimension_semantics = [#tpu.dimension_semantics<parallel>], iteration_bounds = array<i64: 1>, scalar_prefetch = 0 : i64, scratch_operands = 0 : i64, tpu.core_type = #tpu.core_type<tc>, window_params = [{transform_indices = @transform_0, window_bounds = array<i64: 8, 128>}, {pipeline_mode = #tpu.pipeline_mode<synchronous>, transform_indices = @transform_1, window_bounds = array<i64: 128, 128>}, {pipeline_mode = #tpu.pipeline_mode<synchronous>, transform_indices = @transform_2, window_bounds = array<i64: 1, 128>}, {pipeline_mode = #tpu.pipeline_mode<synchronous>, transform_indices = @transform_3, window_bounds = array<i64: 128, 128>}, {pipeline_mode = #tpu.pipeline_mode<synchronous>, transform_indices = @transform_4, window_bounds = array<i64: 128, 128>}, {transform_indices = @transform_5, window_bounds = array<i64: 8, 128>}]} {
    %c0 = arith.constant 0 : index
    %c0_0 = arith.constant 0 : index
    %0 = vector.load %arg1[%c0, %c0_0] : memref<8x128xbf16, #tpu.memory_space<vmem>>, vector<8x128xbf16>
    %c0_1 = arith.constant 0 : index
    %c0_2 = arith.constant 0 : index
    %1 = vector.load %arg2[%c0_1, %c0_2] : memref<128x128xbf16, #tpu.memory_space<vmem>>, vector<128x128xbf16>
    %cst = arith.constant dense<0.000000e+00> : vector<8x128xf32>
    %2 = tpu.matmul %0, %1, %cst {dimension_numbers = #tpu.dot_dimension_numbers<[1], [0], [0], [1], [0, 0, 1, 1], [], []>} : vector<8x128xbf16>, vector<128x128xbf16>, vector<8x128xf32> -> vector<8x128xf32>
    %c0_3 = arith.constant 0 : index
    %c0_4 = arith.constant 0 : index
    %3 = vector.load %arg3[%c0_3, %c0_4] : memref<1x128xf32, #tpu.memory_space<vmem>>, vector<1x128xf32>
    %4 = vector.broadcast %3 : vector<1x128xf32> to vector<8x128xf32>
    %5 = arith.addf %2, %4 : vector<8x128xf32>
    %cst_5 = arith.constant 0.000000e+00 : f32
    %6 = vector.broadcast %cst_5 : f32 to vector<8x128xf32>
    %7 = arith.maximumf %5, %6 : vector<8x128xf32>
    %8 = arith.truncf %7 : vector<8x128xf32> to vector<8x128xbf16>
    %c0_6 = arith.constant 0 : index
    %c0_7 = arith.constant 0 : index
    %9 = vector.load %arg4[%c0_6, %c0_7] : memref<128x128xbf16, #tpu.memory_space<vmem>>, vector<128x128xbf16>
    %cst_8 = arith.constant dense<0.000000e+00> : vector<8x128xf32>
    %10 = tpu.matmul %8, %9, %cst_8 {dimension_numbers = #tpu.dot_dimension_numbers<[1], [0], [0], [1], [0, 0, 1, 1], [], []>} : vector<8x128xbf16>, vector<128x128xbf16>, vector<8x128xf32> -> vector<8x128xf32>
    %cst_9 = arith.constant 0.000000e+00 : f32
    %11 = vector.broadcast %cst_9 : f32 to vector<8x128xf32>
    %12 = arith.maximumf %10, %11 : vector<8x128xf32>
    %13 = arith.truncf %12 : vector<8x128xf32> to vector<8x128xbf16>
    %c0_10 = arith.constant 0 : index
    %c0_11 = arith.constant 0 : index
    %14 = vector.load %arg5[%c0_10, %c0_11] : memref<128x128xbf16, #tpu.memory_space<vmem>>, vector<128x128xbf16>
    %cst_12 = arith.constant dense<0.000000e+00> : vector<8x128xf32>
    %15 = tpu.matmul %13, %14, %cst_12 {dimension_numbers = #tpu.dot_dimension_numbers<[1], [0], [0], [1], [0, 0, 1, 1], [], []>} : vector<8x128xbf16>, vector<128x128xbf16>, vector<8x128xf32> -> vector<8x128xf32>
    %c0_13 = arith.constant 0 : index
    %c0_14 = arith.constant 0 : index
    %16 = vector.load %arg6[%c0_13, %c0_14] : memref<8x128xf32, #tpu.memory_space<vmem>>, vector<8x128xf32>
    tpu.vector_store %arg6[%c0_13, %c0_14], %15 {strides = array<i32>} : memref<8x128xf32, #tpu.memory_space<vmem>>, vector<8x128xf32>,
    return
  }
  func.func @transform_0(%arg0: i32) -> (i32, i32) {
    %c0_i32 = arith.constant 0 : i32
    %c0_i32_0 = arith.constant 0 : i32
    return %arg0, %c0_i32 : i32, i32
  }
  func.func @transform_1(%arg0: i32) -> (i32, i32) {
    %c0_i32 = arith.constant 0 : i32
    %c0_i32_0 = arith.constant 0 : i32
    %c0_i32_1 = arith.constant 0 : i32
    return %c0_i32, %c0_i32_0 : i32, i32
  }
  func.func @transform_2(%arg0: i32) -> (i32, i32) {
    %c0_i32 = arith.constant 0 : i32
    %c0_i32_0 = arith.constant 0 : i32
    %c0_i32_1 = arith.constant 0 : i32
    return %c0_i32, %c0_i32_0 : i32, i32
  }
  func.func @transform_3(%arg0: i32) -> (i32, i32) {
    %c0_i32 = arith.constant 0 : i32
    %c0_i32_0 = arith.constant 0 : i32
    %c0_i32_1 = arith.constant 0 : i32
    return %c0_i32, %c0_i32_0 : i32, i32
  }
  func.func @transform_4(%arg0: i32) -> (i32, i32) {
    %c0_i32 = arith.constant 0 : i32
    %c0_i32_0 = arith.constant 0 : i32
    %c0_i32_1 = arith.constant 0 : i32
    return %c0_i32, %c0_i32_0 : i32, i32
  }
  func.func @transform_5(%arg0: i32) -> (i32, i32) {
    %c0_i32 = arith.constant 0 : i32
    %c0_i32_0 = arith.constant 0 : i32
    return %arg0, %c0_i32 : i32, i32
  }
}

</mosaic_0001>

<bundles_post_ra>
// kernel: bigmlp_forward.1
= control target key start
LH: loop header
LB: loop body
LE: loop exit
PB: predicated region body
PF: predicated region fallthrough
CT: control target
= control target key end

     0   :  { %10 = vsyncpa [#allocation3], 0  ;;  %s569_s0 = inlined_call_operand.vmem [shape: bf16[8,128], index: 0, kind: input, shape index: {}]   ;;  %s570_s1 = inlined_call_operand.hbm [shape: bf16[128,128], index: 1, kind: input, shape index: {}]   ;;  %s571_s2 = inlined_call_operand.vmem [shape: f32[1,128], index: 2, kind: input, shape index: {}]   ;;  %s572_s3 = inlined_call_operand.hbm [shape: bf16[128,128], index: 3, kind: input, shape index: {}]   ;;  %s573_s4 = inlined_call_operand.hbm [shape: bf16[128,128], index: 4, kind: input, shape index: {}]   ;;  %s574_s5 = inlined_call_operand.vmem [shape: f32[8,128], index: 5, kind: output, shape index: {}]  }
   0x1   :  { %11 = vsyncpa [#allocation5], 0  ;;  %s33_s20 = sshll.u32 %s572_s3, 4  ;;  %s516_s21 = smov [#allocation4]   ;;  %s34_s20 = int_to_ptr.hbm [resolvable:$true] %s33_s20 }
   0x2   :  { %s35_s22 = sshll.u32 %s516_s21, 4  ;;  %s18_s25 = sshll.u32 %s570_s1, 4  ;;  %s36_s22 = int_to_ptr.vmem [resolvable:$true] %s35_s22  ;;  %s19_s25 = int_to_ptr.hbm [resolvable:$true] %s18_s25 }
   0x3   :  { %s517_s26 = smov 64   ;;  %s518_s27 = smov 4  }
   0x4   :  { %41 = dma.hbm_to_vmem [thread:$0]  %s34_s20, 1024, %s36_s22, [#allocation5], %s517_s26, %s517_s26, %s518_s27  }
   0x5   :  { %s519_s28 = smov [#allocation2]   ;;  %s46_s7 = sshll.u32 %s573_s4, 4  ;;  %s47_s7 = int_to_ptr.hbm [resolvable:$true] %s46_s7 }
   0x6   :  { %s20_s29 = sshll.u32 %s519_s28, 4  ;;  %s520_s3 = smov [#allocation6]   ;;  %s21_s29 = int_to_ptr.vmem [resolvable:$true] %s20_s29 }
   0x7   :  { %26 = dma.hbm_to_vmem [thread:$0]  %s19_s25, 1024, %s21_s29, [#allocation3], %s517_s26, %s517_s26, %s518_s27  }
   0x8   :  { %s48_s8 = sshll.u32 %s520_s3, 4  ;;  %s49_s8 = int_to_ptr.vmem [resolvable:$true] %s48_s8 }
   0x9   :  { %54 = dma.hbm_to_vmem [thread:$0]  %s47_s7, 1024, %s49_s8, [#allocation5], %s517_s26, %s517_s26, %s518_s27  }
   0xa   :  { %512 = dma.done.wait [#allocation3], 1024  }
   0xb   :  { %513 = vsyncadd [#allocation3], 4294966272 }
   0xc   :  { %514 = dma.done.wait [#allocation5], 2048  }
   0xd   :  { %515 = vsyncadd [#allocation5], 4294965248  ;;  %v417_v0 = vld [vmem:[#allocation2 + $0x38] sm:$0xff]  ;;  %v416_v1 = vld [vmem:[#allocation2 + $0x30] sm:$0xff] }
   0xe   :  { %136 = vmatpush.bf16.msra.mxu0 %v417_v0  ;;  %v425_v2 = vld [vmem:[#allocation4 + $0x38] sm:$0xff]  ;;  %v424_v3 = vld [vmem:[#allocation4 + $0x30] sm:$0xff]  ;;  %v415_v4 = vld [vmem:[#allocation2 + $0x28] sm:$0xff] }
   0xf   :  { %215 = vmatpush.bf16.msra.mxu1 %v425_v2  ;;  %v423_v5 = vld [vmem:[#allocation4 + $0x28] sm:$0xff]  ;;  %v414_v6 = vld [vmem:[#allocation2 + $0x20] sm:$0xff]  ;;  %v413_v8 = vld [vmem:[#allocation2 + $0x18] sm:$0xff] }
  0x10   :  { %v422_v7 = vld [vmem:[#allocation4 + $0x20] sm:$0xff]  ;;  %v421_v9 = vld [vmem:[#allocation4 + $0x18] sm:$0xff]  ;;  %v412_v10 = vld [vmem:[#allocation2 + $0x10] sm:$0xff] }
  0x11   :  { %v420_v11 = vld [vmem:[#allocation4 + $0x10] sm:$0xff]  ;;  %v411_v12 = vld [vmem:[#allocation2 + $0x8] sm:$0xff]  ;;  %v410_v13 = vld [vmem:[#allocation2] sm:$0xff] }
  0x12   :  { %137 = vmatpush.bf16.msra.mxu0 %v416_v1  ;;  %v67_v14 = vld [vmem:[%s569_s0] sm:$0xf]  ;;  %v419_v15 = vld [vmem:[#allocation4 + $0x8] sm:$0xff]  ;;  %v433_v17 = vld [vmem:[#allocation6 + $0x38] sm:$0xff] }
  0x13   :  { %216 = vmatpush.bf16.msra.mxu1 %v424_v3  ;;  %v418_v16 = vld [vmem:[#allocation4] sm:$0xff]  ;;  %294 = vmatpush.bf16.msra.mxu2 %v433_v17  ;;  %v432_v18 = vld [vmem:[#allocation6 + $0x30] sm:$0xff]  ;;  %v431_v19 = vld [vmem:[#allocation6 + $0x28] sm:$0xff] }
  0x14   :  { %v430_v20 = vld [vmem:[#allocation6 + $0x20] sm:$0xff]  ;;  %v429_v21 = vld [vmem:[#allocation6 + $0x18] sm:$0xff]  ;;  %v428_v22 = vld [vmem:[#allocation6 + $0x10] sm:$0xff] }
  0x15   :  { %v439_v23 = vld [vmem:[%s571_s2] ss:$0 sm:$0xff]  ;;  %v427_v24 = vld [vmem:[#allocation6 + $0x8] sm:$0xff] }
  0x16   :  { %138 = vmatpush.bf16.msra.mxu0 %v415_v4  ;;  %v426_v30 = vld [vmem:[#allocation6] sm:$0xff] }
  0x17   :  { %217 = vmatpush.bf16.msra.mxu1 %v423_v5  ;;  %295 = vmatpush.bf16.msra.mxu2 %v432_v18 }
  0x1a   :  { %139 = vmatpush.bf16.msra.mxu0 %v414_v6 }
  0x1b   :  { %218 = vmatpush.bf16.msra.mxu1 %v422_v7  ;;  %296 = vmatpush.bf16.msra.mxu2 %v431_v19 }
  0x1e   :  { %140 = vmatpush.bf16.msra.mxu0 %v413_v8 }
  0x1f   :  { %219 = vmatpush.bf16.msra.mxu1 %v421_v9  ;;  %297 = vmatpush.bf16.msra.mxu2 %v430_v20 }
  0x22   :  { %141 = vmatpush.bf16.msra.mxu0 %v412_v10 }
  0x23   :  { %220 = vmatpush.bf16.msra.mxu1 %v420_v11  ;;  %298 = vmatpush.bf16.msra.mxu2 %v429_v21 }
  0x26   :  { %142 = vmatpush.bf16.msra.mxu0 %v411_v12 }
  0x27   :  { %221 = vmatpush.bf16.msra.mxu1 %v419_v15  ;;  %299 = vmatpush.bf16.msra.mxu2 %v428_v22 }
  0x2a   :  { %143 = vmatpush.bf16.msra.mxu0 %v410_v13 }
  0x2b   :  { %222 = vmatpush.bf16.msra.mxu1 %v418_v16  ;;  %300 = vmatpush.bf16.msra.mxu2 %v427_v24 }
  0x2d   :  { %144 = vmatmul.bf16.vlgmr.msra.gmra.mxu0 %v67_v14 }
  0x2f   :  { %301 = vmatpush.bf16.msra.mxu2 %v426_v30 }
  0xaa   :  { %v145_v25 = vpop.f32.mrf.mxu0 }
  0xab   :  { %v146_v26 = vadd.f32 %v439_v23, %v145_v25 }
  0xad   :  { %v149_v27 = vmax.f32 %v146_v26, 0.0 }
  0xaf   :  { %v150_v28 = vpack.c.bf16 %v149_v27, %v149_v27 }
  0xb1   :  { %223 = vmatmul.bf16.vlgmr.msra.gmra.mxu1 %v150_v28 }
  0xb2   :  { %v147_v29 = vpop.f32.mrf.mxu0 }
 0x12e   :  { %v224_v31 = vpop.f32.mrf.mxu1 }
 0x12f   :  { %v228_v32 = vmax.f32 %v224_v31, 0.0 }
 0x131   :  { %v229_v33 = vpack.c.bf16 %v228_v32, %v228_v32 }
 0x133   :  { %302 = vmatmul.bf16.vlgmr.msra.gmra.mxu2 %v229_v33 }
 0x136   :  { %v226_v34 = vpop.f32.mrf.mxu1 }
 0x1b6   :  { %v303_v35 = vpop.f32.mrf.mxu2 }
 0x1b7   :  { %307 = vst [vmem:[%s574_s5] sm:$0xff] %v303_v35 }
 0x1be   :  { %v305_v36 = vpop.f32.mrf.mxu2 }
 0x1bf   :  { %312 = vsyncpa [#allocation3], 1 }
 0x1c0   :  { %313 = vsyncpa [#allocation5], 1 }

</bundles_post_ra>
